<compile_context>
chip_gen: v6e
topology: v6e:2x2x1
jax: 0.10.0
libtpu: 0.0.40
codegen_flags: <defaults>
</compile_context>

<pallas_src>
import functools
import re

import jax
import jax.numpy as jnp
from jax.experimental import pallas as pl
from jax.experimental.pallas import tpu as pltpu


# ---------------------------------------------------------------------------
# Pallas kernel: one (TR, TL) tile of  y = x * scale + shift
# ---------------------------------------------------------------------------
def _fbn_kernel(x_ref, scale_ref, shift_ref, o_ref):
    # (TR, TL) * (TR, 1) + (TR, 1) — memory-bound VPU work. The compute dtype
    # is chosen by the wrapper via the dtype of scale/shift (f32, or bf16 on
    # chips with a bf16 VALU); jnp promotion handles the upcast when needed.
    o_ref[...] = (x_ref[...] * scale_ref[...] + shift_ref[...]).astype(o_ref.dtype)


def _tpu_generation():
    """Best-effort TPU generation (5 / 6 / 7 ...); defaults to 6 if unknown."""
    try:
        kind = jax.devices()[0].device_kind.lower()
    except Exception:
        return 6
    m = re.search(r"(\d+)", kind)
    return int(m.group(1)) if m else 6


def _pick_tile(dim, align, max_tile):
    """Largest legal tile <= max_tile under the (8, 128) block constraint.

    A full-extent block is always legal; otherwise return an `align`-multiple
    tile and rely on the pl.cdiv grid — the *array* does not need to be
    block-divisible, Pallas masks the boundary block.
    """
    if dim <= max_tile:
        return dim
    return max(align, (max_tile // align) * align)


# ---------------------------------------------------------------------------
# FrozenBatchNorm2d.forward equivalent
# ---------------------------------------------------------------------------
@functools.partial(jax.jit, static_argnames=("eps",))
def frozen_batch_norm_2d(x, weight, bias, running_mean, running_var, eps=1e-5):
    """x: (N, C, H, W); weight/bias/running_mean/running_var: (C,)."""
    N, C, H, W = x.shape
    f32 = jnp.float32

    # Frozen per-channel affine (tiny O(C) glue; eps inside rsqrt as in ref).
    scale = weight.astype(f32) * jax.lax.rsqrt(running_var.astype(f32) + eps)
    shift = bias.astype(f32) - running_mean.astype(f32) * scale

    # Lane-dense view: rows are (n, c), lanes are H*W.
    R, L = N * C, H * W
    x2 = x.reshape(R, L)

    gen = _tpu_generation()
    itemsize = jnp.dtype(x.dtype).itemsize

    # bf16 compute where the VPU supports it (v6e/v7x); f32 everywhere else.
    compute_dtype = f32
    if x.dtype == jnp.bfloat16 and gen >= 6:
        compute_dtype = jnp.bfloat16
    scale_r = jnp.tile(scale, N).astype(compute_dtype).reshape(R, 1)  # row r -> ch r % C
    shift_r = jnp.tile(shift, N).astype(compute_dtype).reshape(R, 1)

    # Generation-specific block budget (in f32-equivalent elements).
    if gen >= 7:
        # ~8 MiB block: at 3.2 TB/s HBM, 2 MiB blocks lose ~20% to the
        # ~0.35 us/step overhead. 4 pipeline buffers x 8 MiB = 32 MiB, so raise
        # the scoped-VMEM limit above the 32 MiB default (64 MiB physical).
        max_tr, max_tl_elems, vmem_limit = 256, 8192, 48 << 20
    elif gen == 6:
        # ~4 MiB block; 4 x 4 MiB = 16 MiB fits the 32 MiB scoped default.
        max_tr, max_tl_elems, vmem_limit = 256, 4096, None
    else:
        # v5e and older: ~2 MiB block already ~94% of roofline; 16 MiB scoped.
        max_tr, max_tl_elems, vmem_limit = 256, 2048, None

    sublane_align = max(8, 32 // itemsize)          # 8 f32 / 16 bf16 / 32 int8
    max_tl = max_tl_elems * max(1, 4 // itemsize)   # keep per-step DMA bytes ~const

    TR = _pick_tile(R, sublane_align, max_tr)
    TL = _pick_tile(L, 128, max_tl)
    grid = (pl.cdiv(R, TR), pl.cdiv(L, TL))

    cp_kwargs = dict(dimension_semantics=("parallel", "parallel"))
    if vmem_limit is not None:
        cp_kwargs["vmem_limit_bytes"] = vmem_limit

    out2 = pl.pallas_call(
        _fbn_kernel,
        out_shape=jax.ShapeDtypeStruct((R, L), x.dtype),
        grid=grid,
        in_specs=[
            pl.BlockSpec((TR, TL), lambda i, j: (i, j)),
            pl.BlockSpec((TR, 1), lambda i, j: (i, 0)),
            pl.BlockSpec((TR, 1), lambda i, j: (i, 0)),
        ],
        out_specs=pl.BlockSpec((TR, TL), lambda i, j: (i, j)),
        compiler_params=pltpu.CompilerParams(**cp_kwargs),
    )(x2, scale_r, shift_r)

    return out2.reshape(N, C, H, W)


if __name__ == "__main__":
    key = jax.random.PRNGKey(0)
    kx, kw, kb, km, kv = jax.random.split(key, 5)

    N, C, H, W = 2, 4, 16, 16
    x = jax.random.normal(kx, (N, C, H, W), jnp.float32)
    weight = jax.random.normal(kw, (C,), jnp.float32)
    bias = jax.random.normal(kb, (C,), jnp.float32)
    running_mean = jax.random.normal(km, (C,), jnp.float32)
    running_var = jax.random.uniform(kv, (C,), jnp.float32, minval=0.5, maxval=2.0)

    y = frozen_batch_norm_2d(x, weight, bias, running_mean, running_var)
    y = jax.block_until_ready(y)

    # Pure-JAX reference mirroring the PyTorch forward exactly.
    eps = 1e-5
    scale_ref = weight * jax.lax.rsqrt(running_var + eps)
    shift_ref = bias - running_mean * scale_ref
    y_ref = x * scale_ref.reshape(1, C, 1, 1) + shift_ref.reshape(1, C, 1, 1)

    assert y.shape == (N, C, H, W) and y.dtype == jnp.float32
    assert jnp.allclose(y, y_ref, rtol=1e-6, atol=1e-6)
    print("KERNEL_OK")
</pallas_src>

<mosaic_0001>
module attributes {stable_mosaic.version = 11 : i64} {
  func.func @_fbn_kernel(%arg0: i32, %arg1: i32, %arg2: memref<8x256xf32, #tpu.memory_space<vmem>>, %arg3: memref<8x1xf32, #tpu.memory_space<vmem>>, %arg4: memref<8x1xf32, #tpu.memory_space<vmem>>, %arg5: memref<8x256xf32, #tpu.memory_space<vmem>>) attributes {dimension_semantics = [#tpu.dimension_semantics<parallel>, #tpu.dimension_semantics<parallel>], iteration_bounds = array<i64: 1, 1>, scalar_prefetch = 0 : i64, scratch_operands = 0 : i64, tpu.core_type = #tpu.core_type<tc>, window_params = [{transform_indices = @transform_0, window_bounds = array<i64: 8, 256>}, {transform_indices = @transform_1, window_bounds = array<i64: 8, 1>}, {transform_indices = @transform_2, window_bounds = array<i64: 8, 1>}, {transform_indices = @transform_3, window_bounds = array<i64: 8, 256>}]} {
    %c0 = arith.constant 0 : index
    %c0_0 = arith.constant 0 : index
    %0 = vector.load %arg2[%c0, %c0_0] : memref<8x256xf32, #tpu.memory_space<vmem>>, vector<8x256xf32>
    %c0_1 = arith.constant 0 : index
    %c0_2 = arith.constant 0 : index
    %1 = vector.load %arg3[%c0_1, %c0_2] : memref<8x1xf32, #tpu.memory_space<vmem>>, vector<8x1xf32>
    %2 = vector.broadcast %1 : vector<8x1xf32> to vector<8x256xf32>
    %3 = arith.mulf %0, %2 : vector<8x256xf32>
    %c0_3 = arith.constant 0 : index
    %c0_4 = arith.constant 0 : index
    %4 = vector.load %arg4[%c0_3, %c0_4] : memref<8x1xf32, #tpu.memory_space<vmem>>, vector<8x1xf32>
    %5 = vector.broadcast %4 : vector<8x1xf32> to vector<8x256xf32>
    %6 = arith.addf %3, %5 : vector<8x256xf32>
    %c0_5 = arith.constant 0 : index
    %c0_6 = arith.constant 0 : index
    %7 = vector.load %arg5[%c0_5, %c0_6] : memref<8x256xf32, #tpu.memory_space<vmem>>, vector<8x256xf32>
    tpu.vector_store %arg5[%c0_5, %c0_6], %6 {strides = array<i32>} : memref<8x256xf32, #tpu.memory_space<vmem>>, vector<8x256xf32>,
    return
  }
  func.func @transform_0(%arg0: i32, %arg1: i32) -> (i32, i32) {
    %c0_i32 = arith.constant 0 : i32
    return %arg0, %arg1 : i32, i32
  }
  func.func @transform_1(%arg0: i32, %arg1: i32) -> (i32, i32) {
    %c0_i32 = arith.constant 0 : i32
    %c0_i32_0 = arith.constant 0 : i32
    return %arg0, %c0_i32 : i32, i32
  }
  func.func @transform_2(%arg0: i32, %arg1: i32) -> (i32, i32) {
    %c0_i32 = arith.constant 0 : i32
    %c0_i32_0 = arith.constant 0 : i32
    return %arg0, %c0_i32 : i32, i32
  }
  func.func @transform_3(%arg0: i32, %arg1: i32) -> (i32, i32) {
    %c0_i32 = arith.constant 0 : i32
    return %arg0, %arg1 : i32, i32
  }
}

</mosaic_0001>

<bundles_post_ra>
// kernel: tile.18
= control target key start
LH: loop header
LB: loop body
LE: loop exit
PB: predicated region body
PF: predicated region fallthrough
CT: control target
= control target key end

     0   :  { %s22_s0 = inlined_call_operand.vmem [shape: f32[4], index: 0, kind: input, shape index: {}]   ;;  %s23_s1 = inlined_call_operand.vmem [shape: f32[2,4], index: 1, kind: output, shape index: {}]  }
   0x1   :  { %v4_v0 = vld [vmem:[%s22_s0] ss:$0 sm:$0xff] }
   0x2   :  { %5 = vst [vmem:[%s23_s1] sm:$0x3] %v4_v0 }

// kernel: tile.0
= control target key start
LH: loop header
LB: loop body
LE: loop exit
PB: predicated region body
PF: predicated region fallthrough
CT: control target
= control target key end

     0   :  { %s35_s8 = smov 125   ;;  %vm8_vm0 = vcmask 7168   ;;  %s36_s11 = smov 126   ;;  %s62_s0 = inlined_call_operand.vmem [shape: f32[2,4], index: 0, kind: input, shape index: {}]   ;;  %s63_s1 = inlined_call_operand.vmem [shape: f32[8,1], index: 1, kind: output, shape index: {}]  }
   0x1   :  { %v5_v0 = vld [vmem:[%s62_s0] sm:$0x3]  ;;  %s34_s0 = smov 127  }
   0x2   :  { %6 = vst [vmem:[#allocation0] sm:$0x3] %v5_v0 }
   0x9   :  { %v10_v1 = vld [vmem:[#allocation0] sm:$0x3]  }
   0xa   :  { %v22_v2 = vld [vmem:[#allocation0] sm:$0x3]   ;;  %11 = vrot.lane.b32.xlu0 %v10_v1, %s34_s0 }
   0xb   :  { %23 = vrot.lane.b32.xlu1 %v22_v2, %s35_s8  ;;  %v7_v3 = vld [vmem:[#allocation0] sm:$0x3]  }
   0xc   :  { %v16_v4 = vld [vmem:[#allocation0] sm:$0x3]   ;;  %9 = vst.msk [vmem:[%s63_s1] ss:$4 sm:$0x3] %vm8_vm0, %v7_v3  }
   0xe   :  { %17 = vrot.lane.b32.xlu0 %v16_v4, %s36_s11 }
  0x7c   :  { %v12_v5 = vpop.permute.xlu0 %11  }
  0x7d   :  { %v24_v6 = vpop.permute.xlu1 %23   ;;  %28 = vst.msk [vmem:[%s63_s1 + $0x1] ss:$4 sm:$0x3] %vm8_vm0, %v12_v5  }
  0x7e   :  { %30 = vst.msk [vmem:[%s63_s1 + $0x3] ss:$4 sm:$0x3] %vm8_vm0, %v24_v6  }
  0x80   :  { %v18_v7 = vpop.permute.xlu0 %17  }
  0x81   :  { %29 = vst.msk [vmem:[%s63_s1 + $0x2] ss:$4 sm:$0x3] %vm8_vm0, %v18_v7  }

// kernel: frozen_batch_norm_2d.1
= control target key start
LH: loop header
LB: loop body
LE: loop exit
PB: predicated region body
PF: predicated region fallthrough
CT: control target
= control target key end

     0   :  { %v40_v0 = vmov 0   ;;  %s79_s1 = inlined_call_operand.vmem [shape: f32[8,1], index: 1, kind: input, shape index: {}]   ;;  %s80_s2 = inlined_call_operand.vmem [shape: f32[8,1], index: 2, kind: input, shape index: {}]   ;;  %s81_s0 = inlined_call_operand.vmem [shape: f32[8,256], index: 0, kind: input, shape index: {}]   ;;  %s82_s3 = inlined_call_operand.vmem [shape: f32[8,256], index: 3, kind: output, shape index: {}]  }
   0x1   :  { %39 = vset.pattern.permute.xlu0 %v40_v0  ;;  %v16_v1 = vld [vmem:[%s79_s1] sm:$0xff]  ;;  %v15_v5 = vld [vmem:[%s81_s0 + $0x8] sm:$0xff] }
   0x2   :  { %19 = vperm.xlu0 %39, %v16_v1   ;;  %v24_v2 = vld [vmem:[%s80_s2] sm:$0xff] }
   0x3   :  { %v14_v4 = vld [vmem:[%s81_s0] sm:$0xff] }
   0x6   :  { %27 = vperm.xlu0 %39, %v24_v2  }
  0x7d   :  { %v20_v3 = vpop.permute.xlu0 %19 }
  0x7e   :  { %v22_v6 = vmul.f32 %v20_v3, %v14_v4  ;;  %v23_v7 = vmul.f32 %v20_v3, %v15_v5 }
  0x81   :  { %v28_v8 = vpop.permute.xlu0 %27 }
  0x82   :  { %v30_v9 = vadd.f32 %v28_v8, %v22_v6  ;;  %v31_v10 = vadd.f32 %v28_v8, %v23_v7 }
  0x84   :  { %32 = vst [vmem:[%s82_s3] sm:$0xff] %v30_v9  ;;  %33 = vst [vmem:[%s82_s3 + $0x8] sm:$0xff] %v31_v10 }

</bundles_post_ra>
